<compile_context>
chip_gen: v7x
topology: tpu7x:2x2x1
jax: 0.10.0
libtpu: 0.0.40
codegen_flags: <defaults>
</compile_context>

<pallas_src>
import math

import jax
import jax.numpy as jnp
from jax.experimental import pallas as pl
from jax.experimental.pallas import tpu as pltpu

_LN_EPS = 1e-5  # PyTorch LayerNorm default


# ----------------------------- Pallas kernel -----------------------------

def _generator_traj_kernel(x_ref, w1_ref, b1_ref, g_ref, beta_ref,
                           w2_ref, b2_ref, w3_ref, b3_ref, o_ref):
    # x: (bm, d_model); weights already in (in, out) layout; biases (1, out).
    x = x_ref[...]

    # Linear 1 (MXU)
    h = jnp.dot(x, w1_ref[...], preferred_element_type=jnp.float32) + b1_ref[...]

    # LayerNorm over the last dim (VPU + EUP rsqrt)
    mean = jnp.mean(h, axis=-1, keepdims=True)
    centered = h - mean
    var = jnp.mean(centered * centered, axis=-1, keepdims=True)
    h = centered * jax.lax.rsqrt(var + _LN_EPS) * g_ref[...] + beta_ref[...]

    # ReLU
    h = jnp.maximum(h, 0.0)

    # Linear 2 (MXU)
    h = jnp.dot(h, w2_ref[...], preferred_element_type=jnp.float32) + b2_ref[...]

    # Linear 3 with the pairwise-cumsum matrix pre-folded into (w3, b3)  (MXU)
    o_ref[...] = (jnp.dot(h, w3_ref[...], preferred_element_type=jnp.float32)
                  + b3_ref[...]).astype(o_ref.dtype)


# ----------------------------- wrappers -----------------------------

def prepare_params(pt_params):
    """One-time (outside hot path) conversion from PyTorch layout to kernel layout.

    Also folds the `.view(..., -1, 2).cumsum(-2)` linear map T into the last
    Linear:  (h @ W3^T + b3) @ T == h @ (W3^T @ T) + (b3 @ T).
    """
    out_size = pt_params["w3"].shape[0]
    idx = jnp.arange(out_size)
    # T[i, j] = 1 iff same parity and source pair index <= destination pair index.
    pair_cumsum = (((idx[:, None] % 2) == (idx[None, :] % 2))
                   & ((idx[:, None] // 2) <= (idx[None, :] // 2))).astype(jnp.float32)

    w3_eff = pt_params["w3"].T @ pair_cumsum              # (reg_h, out_size)
    b3_eff = pt_params["b3"].reshape(1, -1) @ pair_cumsum  # (1, out_size)

    return {
        "w1": pt_params["w1"].T, "b1": pt_params["b1"].reshape(1, -1),
        "ln_g": pt_params["ln_g"].reshape(1, -1),
        "ln_b": pt_params["ln_b"].reshape(1, -1),
        "w2": pt_params["w2"].T, "b2": pt_params["b2"].reshape(1, -1),
        "w3": w3_eff, "b3": b3_eff,
    }


def generator_traj_forward(x, kparams):
    """x: (d0, d1, d2, d_model) -> (d0, d1, d2, out_size // 2, 2)."""
    *lead, d_model = x.shape
    M = math.prod(lead)
    h1 = kparams["w1"].shape[1]
    h2 = kparams["w2"].shape[1]
    out_size = kparams["w3"].shape[1]

    x2 = x.reshape(M, d_model).astype(jnp.float32)

    # Tile only the row dimension; keep all hidden dims whole on lanes.
    block_m = min(512, ((M + 7) // 8) * 8)
    num_m = pl.cdiv(M, block_m)
    m_pad = num_m * block_m
    if m_pad != M:
        # Zero-padded rows are harmless (LayerNorm of a zero row is finite).
        x2 = jnp.pad(x2, ((0, m_pad - M), (0, 0)))

    row_spec = lambda shape: pl.BlockSpec(shape, lambda i: (i, 0))
    full_spec = lambda shape: pl.BlockSpec(shape, lambda i: (0, 0))

    out = pl.pallas_call(
        _generator_traj_kernel,
        out_shape=jax.ShapeDtypeStruct((m_pad, out_size), jnp.float32),
        grid=(num_m,),
        in_specs=[
            row_spec((block_m, d_model)),        # x
            full_spec((d_model, h1)),            # w1
            full_spec((1, h1)),                  # b1
            full_spec((1, h1)),                  # ln gamma
            full_spec((1, h1)),                  # ln beta
            full_spec((h1, h2)),                 # w2
            full_spec((1, h2)),                  # b2
            full_spec((h2, out_size)),           # w3 (cumsum folded in)
            full_spec((1, out_size)),            # b3 (cumsum folded in)
        ],
        out_specs=row_spec((block_m, out_size)),
        compiler_params=pltpu.CompilerParams(
            dimension_semantics=("parallel",),
        ),
    )(x2, kparams["w1"], kparams["b1"], kparams["ln_g"], kparams["ln_b"],
      kparams["w2"], kparams["b2"], kparams["w3"], kparams["b3"])

    out = out[:M]
    return out.reshape(*lead, out_size // 2, 2)


# ----------------------------- reference (pure JAX) -----------------------------

def reference_generator_traj(x, pt_params):
    h = x @ pt_params["w1"].T + pt_params["b1"]
    mean = h.mean(-1, keepdims=True)
    var = ((h - mean) ** 2).mean(-1, keepdims=True)
    h = (h - mean) / jnp.sqrt(var + _LN_EPS) * pt_params["ln_g"] + pt_params["ln_b"]
    h = jax.nn.relu(h)
    h = h @ pt_params["w2"].T + pt_params["b2"]
    h = h @ pt_params["w3"].T + pt_params["b3"]
    pred = h.reshape(*h.shape[:-1], h.shape[-1] // 2, 2)
    return jnp.cumsum(pred, axis=-2)


# ----------------------------- main -----------------------------

if __name__ == "__main__":
    # Small shapes consistent with the module's 4-D usage:
    # x: (batch, num_agents, seq, d_model), out_size even (view(..., -1, 2)).
    B, A, S, D = 2, 4, 8, 32
    reg_h_dim = 128
    out_size = 12

    key0 = jax.random.PRNGKey(0)
    ks = jax.random.split(key0, 9)

    def lin_init(kw, kb, fan_in, fan_out):
        s = 1.0 / math.sqrt(fan_in)
        w = jax.random.uniform(kw, (fan_out, fan_in), jnp.float32, -s, s)  # PyTorch (out, in)
        b = jax.random.uniform(kb, (fan_out,), jnp.float32, -s, s)
        return w, b

    w1, b1 = lin_init(ks[0], ks[1], D, reg_h_dim * 2)
    w2, b2 = lin_init(ks[2], ks[3], reg_h_dim * 2, reg_h_dim)
    w3, b3 = lin_init(ks[4], ks[5], reg_h_dim, out_size)
    ln_g = 1.0 + 0.1 * jax.random.normal(ks[6], (reg_h_dim * 2,), jnp.float32)
    ln_b = 0.1 * jax.random.normal(ks[7], (reg_h_dim * 2,), jnp.float32)

    pt_params = {"w1": w1, "b1": b1, "ln_g": ln_g, "ln_b": ln_b,
                 "w2": w2, "b2": b2, "w3": w3, "b3": b3}
    kparams = prepare_params(pt_params)

    x = jax.random.normal(ks[8], (B, A, S, D), jnp.float32)

    out = generator_traj_forward(x, kparams)
    out = jax.block_until_ready(out)

    ref = reference_generator_traj(x, pt_params)
    assert out.shape == (B, A, S, out_size // 2, 2), out.shape
    assert jnp.allclose(out, ref, atol=1e-4, rtol=1e-4), "mismatch vs reference"

    print("KERNEL_OK")
</pallas_src>

<mosaic_0001>
module attributes {stable_mosaic.version = 11 : i64} {
  func.func @_generator_traj_kernel(%arg0: i32, %arg1: memref<64x32xf32, #tpu.memory_space<vmem>>, %arg2: memref<32x256xf32, #tpu.memory_space<vmem>>, %arg3: memref<1x256xf32, #tpu.memory_space<vmem>>, %arg4: memref<1x256xf32, #tpu.memory_space<vmem>>, %arg5: memref<1x256xf32, #tpu.memory_space<vmem>>, %arg6: memref<256x128xf32, #tpu.memory_space<vmem>>, %arg7: memref<1x128xf32, #tpu.memory_space<vmem>>, %arg8: memref<128x12xf32, #tpu.memory_space<vmem>>, %arg9: memref<1x12xf32, #tpu.memory_space<vmem>>, %arg10: memref<64x12xf32, #tpu.memory_space<vmem>>) attributes {dimension_semantics = [#tpu.dimension_semantics<parallel>], iteration_bounds = array<i64: 1>, scalar_prefetch = 0 : i64, scratch_operands = 0 : i64, tpu.core_type = #tpu.core_type<tc>, window_params = [{transform_indices = @transform_0, window_bounds = array<i64: 64, 32>}, {pipeline_mode = #tpu.pipeline_mode<synchronous>, transform_indices = @transform_1, window_bounds = array<i64: 32, 256>}, {pipeline_mode = #tpu.pipeline_mode<synchronous>, transform_indices = @transform_2, window_bounds = array<i64: 1, 256>}, {pipeline_mode = #tpu.pipeline_mode<synchronous>, transform_indices = @transform_3, window_bounds = array<i64: 1, 256>}, {pipeline_mode = #tpu.pipeline_mode<synchronous>, transform_indices = @transform_4, window_bounds = array<i64: 1, 256>}, {pipeline_mode = #tpu.pipeline_mode<synchronous>, transform_indices = @transform_5, window_bounds = array<i64: 256, 128>}, {pipeline_mode = #tpu.pipeline_mode<synchronous>, transform_indices = @transform_6, window_bounds = array<i64: 1, 128>}, {pipeline_mode = #tpu.pipeline_mode<synchronous>, transform_indices = @transform_7, window_bounds = array<i64: 128, 12>}, {pipeline_mode = #tpu.pipeline_mode<synchronous>, transform_indices = @transform_8, window_bounds = array<i64: 1, 12>}, {transform_indices = @transform_9, window_bounds = array<i64: 64, 12>}]} {
    %c0 = arith.constant 0 : index
    %c0_0 = arith.constant 0 : index
    %0 = vector.load %arg1[%c0, %c0_0] : memref<64x32xf32, #tpu.memory_space<vmem>>, vector<64x32xf32>
    %c0_1 = arith.constant 0 : index
    %c0_2 = arith.constant 0 : index
    %1 = vector.load %arg2[%c0_1, %c0_2] : memref<32x256xf32, #tpu.memory_space<vmem>>, vector<32x256xf32>
    %cst = arith.constant dense<0.000000e+00> : vector<64x256xf32>
    %2 = tpu.matmul %0, %1, %cst {dimension_numbers = #tpu.dot_dimension_numbers<[1], [0], [0], [1], [0, 0, 1, 1], [], []>} : vector<64x32xf32>, vector<32x256xf32>, vector<64x256xf32> -> vector<64x256xf32>
    %c0_3 = arith.constant 0 : index
    %c0_4 = arith.constant 0 : index
    %3 = vector.load %arg3[%c0_3, %c0_4] : memref<1x256xf32, #tpu.memory_space<vmem>>, vector<1x256xf32>
    %4 = vector.broadcast %3 : vector<1x256xf32> to vector<64x256xf32>
    %5 = arith.addf %2, %4 : vector<64x256xf32>
    %cst_5 = arith.constant dense<0.000000e+00> : vector<64xf32>
    %6 = vector.multi_reduction <add>, %5, %cst_5 [1] : vector<64x256xf32> to vector<64xf32>
    %7 = vector.shape_cast %6 : vector<64xf32> to vector<64x1xf32>
    %cst_6 = arith.constant 2.560000e+02 : f32
    %8 = vector.broadcast %cst_6 : f32 to vector<64x1xf32>
    %9 = arith.divf %7, %8 : vector<64x1xf32>
    %10 = vector.broadcast %9 : vector<64x1xf32> to vector<64x256xf32>
    %11 = arith.subf %5, %10 : vector<64x256xf32>
    %12 = arith.mulf %11, %11 : vector<64x256xf32>
    %cst_7 = arith.constant dense<0.000000e+00> : vector<64xf32>
    %13 = vector.multi_reduction <add>, %12, %cst_7 [1] : vector<64x256xf32> to vector<64xf32>
    %14 = vector.shape_cast %13 : vector<64xf32> to vector<64x1xf32>
    %cst_8 = arith.constant 2.560000e+02 : f32
    %15 = vector.broadcast %cst_8 : f32 to vector<64x1xf32>
    %16 = arith.divf %14, %15 : vector<64x1xf32>
    %cst_9 = arith.constant 9.99999974E-6 : f32
    %17 = vector.broadcast %cst_9 : f32 to vector<64x1xf32>
    %18 = arith.addf %16, %17 : vector<64x1xf32>
    %19 = math.rsqrt %18 : vector<64x1xf32>
    %20 = vector.broadcast %19 : vector<64x1xf32> to vector<64x256xf32>
    %21 = arith.mulf %11, %20 : vector<64x256xf32>
    %c0_10 = arith.constant 0 : index
    %c0_11 = arith.constant 0 : index
    %22 = vector.load %arg4[%c0_10, %c0_11] : memref<1x256xf32, #tpu.memory_space<vmem>>, vector<1x256xf32>
    %23 = vector.broadcast %22 : vector<1x256xf32> to vector<64x256xf32>
    %24 = arith.mulf %21, %23 : vector<64x256xf32>
    %c0_12 = arith.constant 0 : index
    %c0_13 = arith.constant 0 : index
    %25 = vector.load %arg5[%c0_12, %c0_13] : memref<1x256xf32, #tpu.memory_space<vmem>>, vector<1x256xf32>
    %26 = vector.broadcast %25 : vector<1x256xf32> to vector<64x256xf32>
    %27 = arith.addf %24, %26 : vector<64x256xf32>
    %cst_14 = arith.constant 0.000000e+00 : f32
    %28 = vector.broadcast %cst_14 : f32 to vector<64x256xf32>
    %29 = arith.maximumf %27, %28 : vector<64x256xf32>
    %c0_15 = arith.constant 0 : index
    %c0_16 = arith.constant 0 : index
    %30 = vector.load %arg6[%c0_15, %c0_16] : memref<256x128xf32, #tpu.memory_space<vmem>>, vector<256x128xf32>
    %cst_17 = arith.constant dense<0.000000e+00> : vector<64x128xf32>
    %31 = tpu.matmul %29, %30, %cst_17 {dimension_numbers = #tpu.dot_dimension_numbers<[1], [0], [0], [1], [0, 0, 1, 1], [], []>} : vector<64x256xf32>, vector<256x128xf32>, vector<64x128xf32> -> vector<64x128xf32>
    %c0_18 = arith.constant 0 : index
    %c0_19 = arith.constant 0 : index
    %32 = vector.load %arg7[%c0_18, %c0_19] : memref<1x128xf32, #tpu.memory_space<vmem>>, vector<1x128xf32>
    %33 = vector.broadcast %32 : vector<1x128xf32> to vector<64x128xf32>
    %34 = arith.addf %31, %33 : vector<64x128xf32>
    %c0_20 = arith.constant 0 : index
    %c0_21 = arith.constant 0 : index
    %35 = vector.load %arg8[%c0_20, %c0_21] : memref<128x12xf32, #tpu.memory_space<vmem>>, vector<128x12xf32>
    %cst_22 = arith.constant dense<0.000000e+00> : vector<64x12xf32>
    %36 = tpu.matmul %34, %35, %cst_22 {dimension_numbers = #tpu.dot_dimension_numbers<[1], [0], [0], [1], [0, 0, 1, 1], [], []>} : vector<64x128xf32>, vector<128x12xf32>, vector<64x12xf32> -> vector<64x12xf32>
    %c0_23 = arith.constant 0 : index
    %c0_24 = arith.constant 0 : index
    %37 = vector.load %arg9[%c0_23, %c0_24] : memref<1x12xf32, #tpu.memory_space<vmem>>, vector<1x12xf32>
    %38 = vector.broadcast %37 : vector<1x12xf32> to vector<64x12xf32>
    %39 = arith.addf %36, %38 : vector<64x12xf32>
    %c0_25 = arith.constant 0 : index
    %c0_26 = arith.constant 0 : index
    %40 = vector.load %arg10[%c0_25, %c0_26] : memref<64x12xf32, #tpu.memory_space<vmem>>, vector<64x12xf32>
    tpu.vector_store %arg10[%c0_25, %c0_26], %39 {strides = array<i32>} : memref<64x12xf32, #tpu.memory_space<vmem>>, vector<64x12xf32>,
    return
  }
  func.func @transform_0(%arg0: i32) -> (i32, i32) {
    %c0_i32 = arith.constant 0 : i32
    %c0_i32_0 = arith.constant 0 : i32
    return %arg0, %c0_i32 : i32, i32
  }
  func.func @transform_1(%arg0: i32) -> (i32, i32) {
    %c0_i32 = arith.constant 0 : i32
    %c0_i32_0 = arith.constant 0 : i32
    %c0_i32_1 = arith.constant 0 : i32
    return %c0_i32, %c0_i32_0 : i32, i32
  }
  func.func @transform_2(%arg0: i32) -> (i32, i32) {
    %c0_i32 = arith.constant 0 : i32
    %c0_i32_0 = arith.constant 0 : i32
    %c0_i32_1 = arith.constant 0 : i32
    return %c0_i32, %c0_i32_0 : i32, i32
  }
  func.func @transform_3(%arg0: i32) -> (i32, i32) {
    %c0_i32 = arith.constant 0 : i32
    %c0_i32_0 = arith.constant 0 : i32
    %c0_i32_1 = arith.constant 0 : i32
    return %c0_i32, %c0_i32_0 : i32, i32
  }
  func.func @transform_4(%arg0: i32) -> (i32, i32) {
    %c0_i32 = arith.constant 0 : i32
    %c0_i32_0 = arith.constant 0 : i32
    %c0_i32_1 = arith.constant 0 : i32
    return %c0_i32, %c0_i32_0 : i32, i32
  }
  func.func @transform_5(%arg0: i32) -> (i32, i32) {
    %c0_i32 = arith.constant 0 : i32
    %c0_i32_0 = arith.constant 0 : i32
    %c0_i32_1 = arith.constant 0 : i32
    return %c0_i32, %c0_i32_0 : i32, i32
  }
  func.func @transform_6(%arg0: i32) -> (i32, i32) {
    %c0_i32 = arith.constant 0 : i32
    %c0_i32_0 = arith.constant 0 : i32
    %c0_i32_1 = arith.constant 0 : i32
    return %c0_i32, %c0_i32_0 : i32, i32
  }
  func.func @transform_7(%arg0: i32) -> (i32, i32) {
    %c0_i32 = arith.constant 0 : i32
    %c0_i32_0 = arith.constant 0 : i32
    %c0_i32_1 = arith.constant 0 : i32
    return %c0_i32, %c0_i32_0 : i32, i32
  }
  func.func @transform_8(%arg0: i32) -> (i32, i32) {
    %c0_i32 = arith.constant 0 : i32
    %c0_i32_0 = arith.constant 0 : i32
    %c0_i32_1 = arith.constant 0 : i32
    return %c0_i32, %c0_i32_0 : i32, i32
  }
  func.func @transform_9(%arg0: i32) -> (i32, i32) {
    %c0_i32 = arith.constant 0 : i32
    %c0_i32_0 = arith.constant 0 : i32
    return %arg0, %c0_i32 : i32, i32
  }
}

</mosaic_0001>

<bundles_post_ra>
// kernel: tpu_custom_call.1
= control target key start
LH: loop header
LB: loop body
LE: loop exit
PB: predicated region body
PF: predicated region fallthrough
CT: control target
= control target key end

     0   :  { %14 = vsyncpa [#allocation3], 0  ;;  %s1531_s0 = inlined_call_operand.vmem [shape: f32[64,32], index: 0, kind: input, shape index: {}]   ;;  %s1532_s1 = inlined_call_operand.hbm [shape: f32[32,256], index: 1, kind: input, shape index: {}]   ;;  %s1533_s2 = inlined_call_operand.vmem [shape: f32[1,256], index: 2, kind: input, shape index: {}]   ;;  %s1534_s3 = inlined_call_operand.hbm [shape: f32[1,256], index: 3, kind: input, shape index: {}]   ;;  %s1535_s4 = inlined_call_operand.hbm [shape: f32[1,256], index: 4, kind: input, shape index: {}]   ;;  %s1536_s5 = inlined_call_operand.vmem [shape: f32[256,128], index: 5, kind: input, shape index: {}]   ;;  %s1537_s6 = inlined_call_operand.vmem [shape: f32[1,128], index: 6, kind: input, shape index: {}]   ;;  %s1538_s7 = inlined_call_operand.vmem [shape: f32[128,12], index: 7, kind: input, shape index: {}]   ;;  %s1539_s8 = inlined_call_operand.vmem [shape: f32[1,12], index: 8, kind: input, shape index: {}]   ;;  %s1540_s9 = inlined_call_operand.vmem [shape: f32[64,12], index: 9, kind: output, shape index: {}]  }
   0x1   :  { %15 = vsyncpa [#allocation5], 0  ;;  %s1021_s30 = smov [#allocation4]   ;;  %s1022_s11 = smov [#allocation2]  }
   0x2   :  { %s38_s10 = sshll.u32 %s1021_s30, 4  ;;  %s23_s12 = sshll.u32 %s1022_s11, 4  ;;  %s39_s10 = int_to_ptr.vmem [resolvable:$true] %s38_s10  ;;  %s1077_s12 = int_to_ptr.vmem [resolvable:$true] %s23_s12 }
   0x3   :  { %s951_s15 = scalar_lea.hbm %s1534_s3, 32 }
   0x4   :  { %p952_p0 = scmp.ne.s32.totalorder %s1534_s3, %s951_s15  ;;  %p955_p1 = scmp.lt.u32.totalorder %s951_s15, %s1534_s3 }
   0x6   :  { %p957_p2 = pnand %p955_p1, %p952_p0 }
   0x8   :  { %960 = shalt.err (!%p957_p2)
}
   0x9   :  { %s961_s20 = scalar_lea.vmem %s39_s10, 32  ;;  %p966_p4 = scmp.lt.s32.totalorder %s39_s10, %s39_s10 }
   0xa   :  { %p962_p3 = scmp.ne.s32.totalorder %s39_s10, %s961_s20  ;;  %p967_p5 = scmp.lt.s32.totalorder %s961_s20, %s961_s20 }
   0xc   :  { %p968_p6 = por %p967_p5, %p966_p4 }
   0xe   :  { %p969_p7 = pnand %p968_p6, %p962_p3 }
  0x10   :  { %972 = shalt.err (!%p969_p7)
}
  0x11   :  { %41 = dma.hbm_to_vmem [thread:$0]  %s1534_s3, 32, %s39_s10, [#allocation5]  }
  0x12   :  { %s973_s25 = scalar_lea.hbm %s1532_s1, 1024 }
  0x13   :  { %p974_p8 = scmp.ne.s32.totalorder %s1532_s1, %s973_s25  ;;  %p977_p9 = scmp.lt.u32.totalorder %s973_s25, %s1532_s1 }
  0x15   :  { %p979_p10 = pnand %p977_p9, %p974_p8 }
  0x17   :  { %982 = shalt.err (!%p979_p10)
}
  0x18   :  { %s983_s30 = scalar_lea.vmem %s1077_s12, 1024  ;;  %p988_p12 = scmp.lt.s32.totalorder %s1077_s12, %s1077_s12 }
  0x19   :  { %p984_p11 = scmp.ne.s32.totalorder %s1077_s12, %s983_s30  ;;  %p989_p13 = scmp.lt.s32.totalorder %s983_s30, %s983_s30 }
  0x1b   :  { %p990_p0 = por %p989_p13, %p988_p12 }
  0x1d   :  { %p991_p1 = pnand %p990_p0, %p984_p11 }
  0x1f   :  { %994 = shalt.err (!%p991_p1)
}
  0x20   :  { %s1023_s3 = smov 256   ;;  %s1024_s10 = smov 16  }
  0x21   :  { %29 = dma.hbm_to_vmem [thread:$0]  %s1532_s1, 1024, %s1077_s12, [#allocation3], %s1023_s3, %s1023_s3, %s1024_s10  }
  0x22   :  { %s1025_s14 = smov [#allocation6]   ;;  %s995_s18 = scalar_lea.hbm %s1535_s4, 32 }
  0x23   :  { %s48_s15 = sshll.u32 %s1025_s14, 4  ;;  %p996_p2 = scmp.ne.s32.totalorder %s1535_s4, %s995_s18  ;;  %s49_s15 = int_to_ptr.vmem [resolvable:$true] %s48_s15 }
  0x24   :  { %p999_p3 = scmp.lt.u32.totalorder %s995_s18, %s1535_s4 }
  0x26   :  { %p1001_p4 = pnand %p999_p3, %p996_p2 }
  0x28   :  { %1004 = shalt.err (!%p1001_p4)
}
  0x29   :  { %s1005_s23 = scalar_lea.vmem %s49_s15, 32  ;;  %p1010_p6 = scmp.lt.s32.totalorder %s49_s15, %s49_s15 }
  0x2a   :  { %p1006_p5 = scmp.ne.s32.totalorder %s49_s15, %s1005_s23  ;;  %p1011_p7 = scmp.lt.s32.totalorder %s1005_s23, %s1005_s23 }
  0x2c   :  { %p1012_p8 = por %p1011_p7, %p1010_p6 }
  0x2e   :  { %p1013_p9 = pnand %p1012_p8, %p1006_p5 }
  0x30   :  { %1016 = shalt.err (!%p1013_p9)
}
  0x31   :  { %51 = dma.hbm_to_vmem [thread:$0]  %s1535_s4, 32, %s49_s15, [#allocation5]  }
  0x32   :  { %1017 = dma.done.wait [#allocation3], 1024  }
  0x33   :  { %1018 = vsyncadd [#allocation3], 4294966272 }
  0x34   :  { %1019 = dma.done.wait [#allocation5], 64  }
  0x35   :  { %1020 = vsyncadd [#allocation5], 4294967232  ;;  %v1026_v0 = vmov 0.0   ;;  %v78_v1 = vld [vmem:[#allocation2 + $0x8] sm:$0xff]  ;;  %v80_v2 = vld [vmem:[#allocation2 + $0x18] sm:$0xff]  ;;  %vm97_vm0 = vcmask 261120   ;;  %v87_v21 = vlaneseq }
  0x36   :  { %186 = vmatprep.mubr.f32.mxu0 %v1026_v0  ;;  %v77_v3 = vld [vmem:[#allocation2] sm:$0xff]  ;;  %v857_v4 = vpack.c.bf16 %v80_v2, %v78_v1  ;;  %v79_v5 = vld [vmem:[#allocation2 + $0x10] sm:$0xff]  ;;  %v82_v6 = vld [vmem:[#allocation2 + $0x28] sm:$0xff]  ;;  %vm708_vm1 = vcmask 97280  }
  0x37   :  { %v84_v7 = vld [vmem:[#allocation2 + $0x38] sm:$0xff]  ;;  %v859_v8 = vpack.c.bf16 %v79_v5, %v77_v3  ;;  %v81_v10 = vld [vmem:[#allocation2 + $0x20] sm:$0xff]  ;;  %v83_v11 = vld [vmem:[#allocation2 + $0x30] sm:$0xff]  ;;  %v88_v22 = vshrl.u32 %v87_v21, 7 }
  0x38   :  { %v861_v9 = vpack.c.bf16 %v84_v7, %v82_v6  ;;  %858 = vmatprep.subr.bf16.mxu0 %v857_v4  ;;  %v863_v12 = vpack.c.bf16 %v83_v11, %v81_v10  ;;  %v69_v13 = vld [vmem:[%s1531_s0] sm:$0xff]  ;;  %v70_v14 = vld [vmem:[%s1531_s0 + $0x8] sm:$0xff]  ;;  %v71_v15 = vld [vmem:[%s1531_s0 + $0x10] sm:$0xff] }
  0x39   :  { %860 = vmatpush1.bf16.msra.mxu0 %v859_v8  ;;  %v72_v16 = vld [vmem:[%s1531_s0 + $0x18] sm:$0xff]  ;;  %v73_v17 = vld [vmem:[%s1531_s0 + $0x20] sm:$0xff]  ;;  %v74_v18 = vld [vmem:[%s1531_s0 + $0x28] sm:$0xff]  ;;  %v1152_v23 = vsub.s32 0, %v88_v22  ;;  %v1157_v25 = vsub.s32 1, %v88_v22 }
  0x3a   :  { %862 = vmatprep.subr.bf16.mxu0 %v861_v9  ;;  %v75_v19 = vld [vmem:[%s1531_s0 + $0x30] sm:$0xff]  ;;  %v76_v20 = vld [vmem:[%s1531_s0 + $0x38] sm:$0xff]  ;;  %v85_v24 = vld [vmem:[%s1533_s2] sm:$0x3] }
  0x3b   :  { %v90_v26 = vrot.slane %v85_v24, %v1152_v23  ;;  %v94_v27 = vrot.slane %v85_v24, %v1157_v25  ;;  %v452_v4 = vld [vmem:[%s1536_s5 + $0x80] sm:$0xff]  ;;  %v453_v5 = vld [vmem:[%s1536_s5 + $0x88] sm:$0xff]  ;;  %v454_v9 = vld [vmem:[%s1536_s5 + $0x90] sm:$0xff] }
  0x3c   :  { %v436_v6 = vld [vmem:[%s1536_s5] sm:$0xff]  ;;  %v865_v7 = vpack.c.bf16 %v453_v5, %v452_v4  ;;  %v437_v8 = vld [vmem:[%s1536_s5 + $0x8] sm:$0xff]  ;;  %v455_v10 = vld [vmem:[%s1536_s5 + $0x98] sm:$0xff] }
  0x3d   :  { %864 = vmatpush1.bf16.msra.mxu0 %v863_v12  ;;  %v867_v11 = vpack.c.bf16 %v437_v8, %v436_v6  ;;  %v869_v12 = vpack.c.bf16 %v455_v10, %v454_v9  ;;  %v458_v6 = vld [vmem:[%s1536_s5 + $0xb0] sm:$0xff] }
  0x3e   :  { %866 = vmatprep.subr.bf16.mxu1 %v865_v7  ;;  %v459_v7 = vld [vmem:[%s1536_s5 + $0xb8] sm:$0xff]  ;;  %v442_v10 = vld [vmem:[%s1536_s5 + $0x30] sm:$0xff] }
  0x3f   :  { %868 = vmatpush3.bf16.msra.mxu1 %v867_v11  ;;  %v877_v9 = vpack.c.bf16 %v459_v7, %v458_v6  ;;  %v443_v11 = vld [vmem:[%s1536_s5 + $0x38] sm:$0xff] }
  0x40   :  { %723 = vmatmul.mubr.msk.f32.vlgmr.msra.gmra.mrb[0].mxu0 %vm97_vm0, %v69_v13  ;;  %v438_v13 = vld [vmem:[%s1536_s5 + $0x10] sm:$0xff]  ;;  %870 = vmatprep.subr.bf16.mxu1 %v869_v12  ;;  %v879_v12 = vpack.c.bf16 %v443_v11, %v442_v10  ;;  %v583_v6 = vld [vmem:[%s1538_s7 + $0x18] sm:$0xff] }
  0x41   :  { %192 = vmatprep.mubr.f32.mxu0 %v1026_v0  ;;  %v587_v10 = vld [vmem:[%s1538_s7 + $0x38] sm:$0xff] }
  0x44   :  { %724 = vmatmul.mubr.msk.f32.gmra.mrb[2].mxu0 %vm97_vm0, %v70_v14  ;;  %v439_v14 = vld [vmem:[%s1536_s5 + $0x18] sm:$0xff] }
  0x45   :  { %198 = vmatprep.mubr.f32.mxu0 %v1026_v0 }
  0x48   :  { %725 = vmatmul.mubr.msk.f32.gmra.mrb[4].mxu0 %vm97_vm0, %v71_v15  ;;  %v871_v15 = vpack.c.bf16 %v439_v14, %v438_v13 }
  0x49   :  { %204 = vmatprep.mubr.f32.mxu0 %v1026_v0 }
  0x4a   :  { %872 = vmatpush3.bf16.msra.mxu1 %v871_v15 }
  0x4c   :  { %726 = vmatmul.mubr.msk.f32.gmra.mrb[6].mxu0 %vm97_vm0, %v72_v16 }
  0x4d   :  { %210 = vmatprep.mubr.f32.mxu0 %v1026_v0 }
  0x50   :  { %727 = vmatmul.mubr.msk.f32.gmra.mrb[8].mxu0 %vm97_vm0, %v73_v17 }
  0x51   :  { %216 = vmatprep.mubr.f32.mxu0 %v1026_v0 }
  0x54   :  { %728 = vmatmul.mubr.msk.f32.gmra.mrb[10].mxu0 %vm97_vm0, %v74_v18 }
  0x55   :  { %222 = vmatprep.mubr.f32.mxu0 %v1026_v0 }
  0x58   :  { %729 = vmatmul.mubr.msk.f32.gmra.mrb[12].mxu0 %vm97_vm0, %v75_v19 }
  0x59   :  { %228 = vmatprep.mubr.f32.mxu0 %v1026_v0 }
  0x5c   :  { %730 = vmatmul.mubr.msk.f32.gmra.mrb[14].mxu0 %vm97_vm0, %v76_v20 }
 0x113   :  { %v188_v28 = vpop.f32.mrb[0].mxu0 }
 0x114   :  { %v1161_v29 = vadd.f32 %v188_v28, %v90_v26  ;;  %v190_v30 = vpop.f32.mrb[1].mxu0 }
 0x115   :  { %v1163_v31 = vadd.f32 %v190_v30, %v94_v27 }
 0x117   :  { %v194_v32 = vpop.f32.mrb[2].mxu0  ;;  %v235_v33 = vadd.f32 %v1163_v31, %v1161_v29 }
 0x118   :  { %v1167_v34 = vadd.f32 %v194_v32, %v90_v26  ;;  %v196_v35 = vpop.f32.mrb[3].mxu0 }
 0x119   :  { %v1169_v36 = vadd.f32 %v196_v35, %v94_v27  ;;  %236 = vadd.xlane.f32.xlu0 %v235_v33 }
 0x11b   :  { %v200_v37 = vpop.f32.mrb[4].mxu0  ;;  %v238_v38 = vadd.f32 %v1169_v36, %v1167_v34 }
 0x11c   :  { %v1173_v39 = vadd.f32 %v200_v37, %v90_v26  ;;  %v202_v40 = vpop.f32.mrb[5].mxu0 }
 0x11d   :  { %v1175_v41 = vadd.f32 %v202_v40, %v94_v27  ;;  %239 = vadd.xlane.f32.xlu0 %v238_v38 }
 0x11f   :  { %v206_v42 = vpop.f32.mrb[6].mxu0  ;;  %v241_v43 = vadd.f32 %v1175_v41, %v1173_v39 }
 0x120   :  { %v1179_v44 = vadd.f32 %v206_v42, %v90_v26  ;;  %v208_v45 = vpop.f32.mrb[7].mxu0 }
 0x121   :  { %v1181_v46 = vadd.f32 %v208_v45, %v94_v27  ;;  %242 = vadd.xlane.f32.xlu1 %v241_v43 }
 0x123   :  { %v212_v47 = vpop.f32.mrb[8].mxu0  ;;  %v244_v48 = vadd.f32 %v1181_v46, %v1179_v44 }
 0x124   :  { %v1185_v49 = vadd.f32 %v212_v47, %v90_v26  ;;  %v214_v50 = vpop.f32.mrb[9].mxu0 }
 0x125   :  { %v1187_v51 = vadd.f32 %v214_v50, %v94_v27  ;;  %245 = vadd.xlane.f32.xlu1 %v244_v48 }
 0x127   :  { %v218_v52 = vpop.f32.mrb[10].mxu0  ;;  %v247_v53 = vadd.f32 %v1187_v51, %v1185_v49 }
 0x128   :  { %v1191_v54 = vadd.f32 %v218_v52, %v90_v26  ;;  %v220_v55 = vpop.f32.mrb[11].mxu0 }
 0x129   :  { %v1193_v56 = vadd.f32 %v220_v55, %v94_v27  ;;  %248 = vadd.xlane.f32.xlu0 %v247_v53  ;;  %v457_v55 = vld [vmem:[%s1536_s5 + $0xa8] sm:$0xff] }
 0x12b   :  { %v224_v57 = vpop.f32.mrb[12].mxu0  ;;  %v250_v58 = vadd.f32 %v1193_v56, %v1191_v54 }
 0x12c   :  { %v1197_v59 = vadd.f32 %v224_v57, %v90_v26  ;;  %v226_v60 = vpop.f32.mrb[13].mxu0 }
 0x12d   :  { %v1199_v61 = vadd.f32 %v226_v60, %v94_v27  ;;  %251 = vadd.xlane.f32.xlu1 %v250_v58  ;;  %v440_v60 = vld [vmem:[%s1536_s5 + $0x20] sm:$0xff] }
 0x12f   :  { %v230_v62 = vpop.f32.mrb[14].mxu0  ;;  %v253_v63 = vadd.f32 %v1199_v61, %v1197_v59 }
 0x130   :  { %v1203_v0 = vadd.f32 %v230_v62, %v90_v26  ;;  %v232_v1 = vpop.f32.mrb[15].mxu0  ;;  %v441_v62 = vld [vmem:[%s1536_s5 + $0x28] sm:$0xff] }
 0x131   :  { %v1205_v2 = vadd.f32 %v232_v1, %v94_v27  ;;  %254 = vadd.xlane.f32.xlu0 %v253_v63  ;;  %v875_v63 = vpack.c.bf16 %v441_v62, %v440_v60  ;;  %v580_v62 = vld [vmem:[%s1538_s7] sm:$0xff] }
 0x133   :  { %v256_v3 = vadd.f32 %v1205_v2, %v1203_v0 }
 0x135   :  { %257 = vadd.xlane.f32.xlu1 %v256_v3 }
 0x1a6   :  { %v237_v16 = vpop.xlane.xlu0 %236 }
 0x1a7   :  { %v260_v17 = vmul.f32 0.00390625, %v237_v16 }
 0x1a9   :  { %v1234_v18 = vsub.f32 %v1161_v29, %v260_v17  ;;  %v1237_v19 = vsub.f32 %v1163_v31, %v260_v17  ;;  %v460_v17 = vld [vmem:[%s1536_s5 + $0xc0] sm:$0xff] }
 0x1aa   :  { %v240_v20 = vpop.xlane.xlu0 %239 }
 0x1ab   :  { %v261_v21 = vmul.f32 0.00390625, %v240_v20  ;;  %v284_v22 = vmul.f32 %v1234_v18, %v1234_v18  ;;  %v285_v24 = vmul.f32 %v1237_v19, %v1237_v19  ;;  %v461_v20 = vld [vmem:[%s1536_s5 + $0xc8] sm:$0xff] }
 0x1ad   :  { %v1244_v26 = vsub.f32 %v1167_v34, %v261_v21  ;;  %v1247_v27 = vsub.f32 %v1169_v36, %v261_v21  ;;  %v300_v28 = vadd.f32 %v285_v24, %v284_v22  ;;  %v881_v22 = vpack.c.bf16 %v461_v20, %v460_v17  ;;  %v444_v24 = vld [vmem:[%s1536_s5 + $0x40] sm:$0xff]  ;;  %v590_v17 = vld [vmem:[%s1538_s7 + $0x50] sm:$0xff]  ;;  %v591_v20 = vld [vmem:[%s1538_s7 + $0x58] sm:$0xff] }
 0x1ae   :  { %v243_v29 = vpop.xlane.xlu1 %242 }
 0x1af   :  { %v262_v30 = vmul.f32 0.00390625, %v243_v29  ;;  %301 = vadd.xlane.f32.xlu0 %v300_v28  ;;  %v286_v31 = vmul.f32 %v1244_v26, %v1244_v26  ;;  %v287_v32 = vmul.f32 %v1247_v27, %v1247_v27  ;;  %v445_v28 = vld [vmem:[%s1536_s5 + $0x48] sm:$0xff] }
 0x1b0   :  { %v883_v29 = vpack.c.bf16 %v445_v28, %v444_v24 }
 0x1b1   :  { %v1254_v33 = vsub.f32 %v1173_v39, %v262_v30  ;;  %v1257_v35 = vsub.f32 %v1175_v41, %v262_v30  ;;  %v303_v34 = vadd.f32 %v287_v32, %v286_v31 }
 0x1b2   :  { %v246_v37 = vpop.xlane.xlu1 %245 }
 0x1b3   :  { %v263_v36 = vmul.f32 0.00390625, %v246_v37  ;;  %304 = vadd.xlane.f32.xlu1 %v303_v34  ;;  %v288_v38 = vmul.f32 %v1254_v33, %v1254_v33  ;;  %v289_v40 = vmul.f32 %v1257_v35, %v1257_v35  ;;  %v462_v34 = vld [vmem:[%s1536_s5 + $0xd0] sm:$0xff]  ;;  %v463_v37 = vld [vmem:[%s1536_s5 + $0xd8] sm:$0xff] }
 0x1b5   :  { %v1264_v42 = vsub.f32 %v1179_v44, %v263_v36  ;;  %v1267_v43 = vsub.f32 %v1181_v46, %v263_v36  ;;  %v306_v39 = vadd.f32 %v289_v40, %v288_v38  ;;  %v456_v46 = vld [vmem:[%s1536_s5 + $0xa0] sm:$0xff]  ;;  %v446_v38 = vld [vmem:[%s1536_s5 + $0x50] sm:$0xff]  ;;  %v447_v40 = vld [vmem:[%s1536_s5 + $0x58] sm:$0xff] }
 0x1b6   :  { %v249_v45 = vpop.xlane.xlu0 %248 }
 0x1b7   :  { %v264_v41 = vmul.f32 0.00390625, %v249_v45  ;;  %307 = vadd.xlane.f32.xlu0 %v306_v39  ;;  %v290_v47 = vmul.f32 %v1264_v42, %v1264_v42  ;;  %v291_v48 = vmul.f32 %v1267_v43, %v1267_v43  ;;  %v887_v39 = vpack.c.bf16 %v447_v40, %v446_v38  ;;  %v392_v38 = vld [vmem:[#allocation6] sm:$0x3] }
 0x1b9   :  { %v1274_v50 = vsub.f32 %v1185_v49, %v264_v41  ;;  %v1277_v52 = vsub.f32 %v1187_v51, %v264_v41  ;;  %v309_v44 = vadd.f32 %v291_v48, %v290_v47  ;;  %v873_v51 = vpack.c.bf16 %v457_v55, %v456_v46  ;;  %v464_v41 = vld [vmem:[%s1536_s5 + $0xe0] sm:$0xff]  ;;  %v465_v47 = vld [vmem:[%s1536_s5 + $0xe8] sm:$0xff]  ;;  %v466_v55 = vld [vmem:[%s1536_s5 + $0xf0] sm:$0xff] }
 0x1ba   :  { %v252_v53 = vpop.xlane.xlu1 %251  ;;  %v889_v48 = vpack.c.bf16 %v465_v47, %v464_v41 }
 0x1bb   :  { %v265_v57 = vmul.f32 0.00390625, %v252_v53  ;;  %310 = vadd.xlane.f32.xlu1 %v309_v44  ;;  %v292_v58 = vmul.f32 %v1274_v50, %v1274_v50  ;;  %v293_v49 = vmul.f32 %v1277_v52, %v1277_v52  ;;  %874 = vmatprep.subr.bf16.mxu1 %v873_v51  ;;  %v448_v44 = vld [vmem:[%s1536_s5 + $0x60] sm:$0xff]  ;;  %v449_v53 = vld [vmem:[%s1536_s5 + $0x68] sm:$0xff]  ;;  %v451_v51 = vld [vmem:[%s1536_s5 + $0x78] sm:$0xff] }
 0x1bc   :  { %876 = vmatpush3.bf16.msra.mxu1 %v875_v63  ;;  %v891_v46 = vpack.c.bf16 %v449_v53, %v448_v44  ;;  %v581_v63 = vld [vmem:[%s1538_s7 + $0x8] sm:$0xff]  ;;  %v1429_v44 = vrot.slane %v392_v38, %v1152_v23  ;;  %v1432_v53 = vrot.slane %v392_v38, %v1157_v25 }
 0x1bd   :  { %v1296_v1 = vsub.f32 %v1191_v54, %v265_v57  ;;  %v1299_v3 = vsub.f32 %v1193_v56, %v265_v57  ;;  %v312_v4 = vadd.f32 %v293_v49, %v292_v58  ;;  %878 = vmatprep.subr.bf16.mxu1 %v877_v9  ;;  %v467_v57 = vld [vmem:[%s1536_s5 + $0xf8] sm:$0xff]  ;;  %v450_v49 = vld [vmem:[%s1536_s5 + $0x70] sm:$0xff] }
 0x1be   :  { %v255_v5 = vpop.xlane.xlu0 %254  ;;  %v893_v58 = vpack.c.bf16 %v467_v57, %v466_v55  ;;  %v895_v60 = vpack.c.bf16 %v451_v51, %v450_v49  ;;  %v586_v9 = vld [vmem:[%s1538_s7 + $0x30] sm:$0xff] }
 0x1bf   :  { %v266_v8 = vmul.f32 0.00390625, %v255_v5  ;;  %313 = vadd.xlane.f32.xlu0 %v312_v4  ;;  %v294_v54 = vmul.f32 %v1296_v1, %v1296_v1  ;;  %v295_v56 = vmul.f32 %v1299_v3, %v1299_v3  ;;  %v582_v4 = vld [vmem:[%s1538_s7 + $0x10] sm:$0xff]  ;;  %v897_v5 = vpack.c.bf16 %v581_v63, %v580_v62 }
 0x1c0   :  { %880 = vmatpush3.bf16.msra.mxu1 %v879_v12  ;;  %v901_v7 = vpack.c.bf16 %v583_v6, %v582_v4  ;;  %v909_v11 = vpack.c.bf16 %v587_v10, %v586_v9  ;;  %v588_v12 = vld [vmem:[%s1538_s7 + $0x40] sm:$0xff] }
 0x1c1   :  { %v1318_v13 = vsub.f32 %v1197_v59, %v266_v8  ;;  %v1321_v14 = vsub.f32 %v1199_v61, %v266_v8  ;;  %v315_v15 = vadd.f32 %v295_v56, %v294_v54  ;;  %882 = vmatprep.subr.bf16.mxu1 %v881_v22  ;;  %v584_v8 = vld [vmem:[%s1538_s7 + $0x20] sm:$0xff]  ;;  %v585_v54 = vld [vmem:[%s1538_s7 + $0x28] sm:$0xff]  ;;  %898 = vmatprep.subr.bf16.mxu0 %v897_v5 }
 0x1c2   :  { %v258_v16 = vpop.xlane.xlu1 %257  ;;  %900 = vmatpush3.bf16.msra.mxu0 %v897_v5  ;;  %v905_v56 = vpack.c.bf16 %v585_v54, %v584_v8 }
 0x1c3   :  { %v267_v21 = vmul.f32 0.00390625, %v258_v16  ;;  %316 = vadd.xlane.f32.xlu1 %v315_v15  ;;  %v296_v59 = vmul.f32 %v1318_v13, %v1318_v13  ;;  %v297_v61 = vmul.f32 %v1321_v14, %v1321_v14  ;;  %902 = vmatprep.subr.bf16.mxu0 %v901_v7  ;;  %v589_v15 = vld [vmem:[%s1538_s7 + $0x48] sm:$0xff] }
 0x1c4   :  { %884 = vmatpush3.bf16.msra.mxu1 %v883_v29  ;;  %v913_v16 = vpack.c.bf16 %v589_v15, %v588_v12 }
 0x1c5   :  { %v1340_v30 = vsub.f32 %v1203_v0, %v267_v21  ;;  %v1343_v31 = vsub.f32 %v1205_v2, %v267_v21  ;;  %v318_v32 = vadd.f32 %v297_v61, %v296_v59  ;;  %v885_v2 = vpack.c.bf16 %v463_v37, %v462_v34 }
 0x1c6   :  { %904 = vmatpush3.bf16.msra.mxu0 %v901_v7  ;;  %v917_v21 = vpack.c.bf16 %v591_v20, %v590_v17 }
 0x1c7   :  { %319 = vadd.xlane.f32.xlu0 %v318_v32  ;;  %v298_v36 = vmul.f32 %v1340_v30, %v1340_v30  ;;  %v299_v0 = vmul.f32 %v1343_v31, %v1343_v31  ;;  %886 = vmatprep.subr.bf16.mxu1 %v885_v2 }
 0x1c8   :  { %888 = vmatpush3.bf16.msra.mxu1 %v887_v39  ;;  %906 = vmatprep.subr.bf16.mxu0 %v905_v56 }
 0x1c9   :  { %v321_v45 = vadd.f32 %v299_v0, %v298_v36  ;;  %890 = vmatprep.subr.bf16.mxu1 %v889_v48  ;;  %v364_v36 = vld [vmem:[#allocation4] sm:$0x3] }
 0x1ca   :  { %908 = vmatpush3.bf16.msra.mxu0 %v905_v56  ;;  %v1422_v40 = vrot.slane %v364_v36, %v1152_v23  ;;  %v1425_v39 = vrot.slane %v364_v36, %v1157_v25 }
 0x1cb   :  { %322 = vadd.xlane.f32.xlu1 %v321_v45  ;;  %910 = vmatprep.subr.bf16.mxu0 %v909_v11 }
 0x1cc   :  { %892 = vmatpush3.bf16.msra.mxu1 %v891_v46 }
 0x1cd   :  { %894 = vmatprep.subr.bf16.mxu1 %v893_v58 }
 0x1ce   :  { %912 = vmatpush3.bf16.msra.mxu0 %v909_v11 }
 0x1cf   :  { %914 = vmatprep.subr.bf16.mxu0 %v913_v16 }
 0x1d0   :  { %896 = vmatpush3.bf16.msra.mxu1 %v895_v60 }
 0x1d2   :  { %916 = vmatpush3.bf16.msra.mxu0 %v913_v16 }
 0x1d3   :  { %918 = vmatprep.subr.bf16.mxu0 %v917_v21 }
 0x1d6   :  { %920 = vmatpush3.bf16.msra.mxu0 %v917_v21 }
 0x23c   :  { %v302_v59 = vpop.xlane.xlu0 %301 }
 0x23d   :  { %v324_v61 = vmul.f32 0.00390625, %v302_v59 }
 0x23f   :  { %v332_v22 = vadd.f32 1e-05, %v324_v61 }
 0x240   :  { %v305_v24 = vpop.xlane.xlu1 %304 }
 0x241   :  { %935 = vrsqrt.f32 %v332_v22  ;;  %v325_v28 = vmul.f32 0.00390625, %v305_v24 }
 0x243   :  { %v333_v29 = vadd.f32 1e-05, %v325_v28 }
 0x244   :  { %v308_v32 = vpop.xlane.xlu0 %307 }
 0x245   :  { %937 = vrsqrt.f32 %v333_v29  ;;  %v326_v34 = vmul.f32 0.00390625, %v308_v32 }
 0x247   :  { %v334_v37 = vadd.f32 1e-05, %v326_v34 }
 0x248   :  { %v311_v0 = vpop.xlane.xlu1 %310 }
 0x249   :  { %939 = vrsqrt.f32 %v334_v37  ;;  %v327_v2 = vmul.f32 0.00390625, %v311_v0 }
 0x24b   :  { %v936_v45 = vpop.eup %935  ;;  %v335_v41 = vadd.f32 1e-05, %v327_v2 }
 0x24c   :  { %v314_v47 = vpop.xlane.xlu0 %313  ;;  %v349_v48 = vmul.f32 %v936_v45, %v1237_v19  ;;  %v348_v46 = vmul.f32 %v936_v45, %v1234_v18 }
 0x24d   :  { %941 = vrsqrt.f32 %v335_v41  ;;  %v328_v55 = vmul.f32 0.00390625, %v314_v47 }
 0x24e   :  { %v377_v57 = vmul.f32 %v1425_v39, %v349_v48  ;;  %v376_v58 = vmul.f32 %v1422_v40, %v348_v46 }
 0x24f   :  { %v938_v49 = vpop.eup %937  ;;  %v336_v51 = vadd.f32 1e-05, %v328_v55 }
 0x250   :  { %v317_v60 = vpop.xlane.xlu1 %316  ;;  %v405_v62 = vadd.f32 %v1432_v53, %v377_v57  ;;  %v404_v19 = vadd.f32 %v1429_v44, %v376_v58  ;;  %v351_v23 = vmul.f32 %v938_v49, %v1247_v27  ;;  %v350_v25 = vmul.f32 %v938_v49, %v1244_v26 }
 0x251   :  { %943 = vrsqrt.f32 %v336_v51  ;;  %v329_v63 = vmul.f32 0.00390625, %v317_v60 }
 0x252   :  { %v421_v18 = vmax.f32 %v405_v62, 0.0  ;;  %v420_v4 = vmax.f32 %v404_v19, 0.0  ;;  %v379_v5 = vmul.f32 %v1425_v39, %v351_v23  ;;  %v378_v6 = vmul.f32 %v1422_v40, %v350_v25 }
 0x253   :  { %v940_v7 = vpop.eup %939  ;;  %v337_v8 = vadd.f32 1e-05, %v329_v63 }
 0x254   :  { %539 = vmatprep.mubr.f32.mxu1 %v421_v18  ;;  %v320_v54 = vpop.xlane.xlu0 %319  ;;  %v407_v56 = vadd.f32 %v1432_v53, %v379_v5  ;;  %v406_v9 = vadd.f32 %v1429_v44, %v378_v6  ;;  %v353_v27 = vmul.f32 %v940_v7, %v1257_v35  ;;  %v352_v26 = vmul.f32 %v940_v7, %v1254_v33 }
 0x255   :  { %945 = vrsqrt.f32 %v337_v8  ;;  %v330_v10 = vmul.f32 0.00390625, %v320_v54  ;;  %540 = vmatmul.mubr.f32.vlgmr.msra.gmra.mrb[0].mxu1 %v420_v4 }
 0x256   :  { %v423_v11 = vmax.f32 %v407_v56, 0.0  ;;  %v422_v12 = vmax.f32 %v406_v9, 0.0  ;;  %v381_v15 = vmul.f32 %v1425_v39, %v353_v27  ;;  %v380_v16 = vmul.f32 %v1422_v40, %v352_v26 }
 0x257   :  { %v942_v17 = vpop.eup %941  ;;  %v338_v20 = vadd.f32 1e-05, %v330_v10 }
 0x258   :  { %v323_v21 = vpop.xlane.xlu1 %322  ;;  %544 = vmatprep.mubr.f32.mxu1 %v423_v11  ;;  %v409_v59 = vadd.f32 %v1432_v53, %v381_v15  ;;  %v408_v61 = vadd.f32 %v1429_v44, %v380_v16  ;;  %v355_v35 = vmul.f32 %v942_v17, %v1267_v43  ;;  %v354_v33 = vmul.f32 %v942_v17, %v1264_v42  ;;  %v731_v11 = vld [vmem:[%s1537_s6] ss:$0 sm:$0xff] }
 0x259   :  { %947 = vrsqrt.f32 %v338_v20  ;;  %v331_v22 = vmul.f32 0.00390625, %v323_v21  ;;  %545 = vmatmul.mubr.f32.gmra.mrb[2].mxu1 %v422_v12 }
 0x25a   :  { %v425_v24 = vmax.f32 %v409_v59, 0.0  ;;  %v424_v28 = vmax.f32 %v408_v61, 0.0  ;;  %v383_v29 = vmul.f32 %v1425_v39, %v355_v35  ;;  %v382_v32 = vmul.f32 %v1422_v40, %v354_v33 }
 0x25b   :  { %v944_v34 = vpop.eup %943  ;;  %v339_v37 = vadd.f32 1e-05, %v331_v22 }
 0x25c   :  { %549 = vmatprep.mubr.f32.mxu1 %v425_v24  ;;  %v411_v36 = vadd.f32 %v1432_v53, %v383_v29  ;;  %v410_v0 = vadd.f32 %v1429_v44, %v382_v32  ;;  %v357_v43 = vmul.f32 %v944_v34, %v1277_v52  ;;  %v356_v42 = vmul.f32 %v944_v34, %v1274_v50 }
 0x25d   :  { %949 = vrsqrt.f32 %v339_v37  ;;  %550 = vmatmul.mubr.f32.gmra.mrb[4].mxu1 %v424_v28 }
 0x25e   :  { %v427_v2 = vmax.f32 %v411_v36, 0.0  ;;  %v426_v38 = vmax.f32 %v410_v0, 0.0  ;;  %v385_v45 = vmul.f32 %v1425_v39, %v357_v43  ;;  %v384_v41 = vmul.f32 %v1422_v40, %v356_v42 }
 0x25f   :  { %v946_v47 = vpop.eup %945 }
 0x260   :  { %554 = vmatprep.mubr.f32.mxu1 %v427_v2  ;;  %v413_v48 = vadd.f32 %v1432_v53, %v385_v45  ;;  %v412_v46 = vadd.f32 %v1429_v44, %v384_v41  ;;  %v359_v55 = vmul.f32 %v946_v47, %v1299_v3  ;;  %v358_v52 = vmul.f32 %v946_v47, %v1296_v1 }
 0x261   :  { %555 = vmatmul.mubr.f32.gmra.mrb[6].mxu1 %v426_v38 }
 0x262   :  { %v429_v50 = vmax.f32 %v413_v48, 0.0  ;;  %v428_v57 = vmax.f32 %v412_v46, 0.0  ;;  %v387_v58 = vmul.f32 %v1425_v39, %v359_v55  ;;  %v386_v49 = vmul.f32 %v1422_v40, %v358_v52 }
 0x263   :  { %v948_v51 = vpop.eup %947 }
 0x264   :  { %559 = vmatprep.mubr.f32.mxu1 %v429_v50  ;;  %v415_v60 = vadd.f32 %v1432_v53, %v387_v58  ;;  %v414_v62 = vadd.f32 %v1429_v44, %v386_v49  ;;  %v361_v19 = vmul.f32 %v948_v51, %v1321_v14  ;;  %v360_v23 = vmul.f32 %v948_v51, %v1318_v13 }
 0x265   :  { %560 = vmatmul.mubr.f32.gmra.mrb[8].mxu1 %v428_v57  ;;  %v732_v57 = vld [vmem:[%s1539_s8] ss:$0 sm:$0xff] }
 0x266   :  { %v431_v3 = vmax.f32 %v415_v60, 0.0  ;;  %v430_v1 = vmax.f32 %v414_v62, 0.0  ;;  %v389_v25 = vmul.f32 %v1425_v39, %v361_v19  ;;  %v388_v63 = vmul.f32 %v1422_v40, %v360_v23 }
 0x267   :  { %v950_v18 = vpop.eup %949 }
 0x268   :  { %564 = vmatprep.mubr.f32.mxu1 %v431_v3  ;;  %v417_v4 = vadd.f32 %v1432_v53, %v389_v25  ;;  %v416_v5 = vadd.f32 %v1429_v44, %v388_v63  ;;  %v363_v6 = vmul.f32 %v950_v18, %v1343_v31  ;;  %v362_v7 = vmul.f32 %v950_v18, %v1340_v30  ;;  %v592_v30 = vld [vmem:[%s1538_s7 + $0x60] sm:$0xff]  ;;  %v593_v31 = vld [vmem:[%s1538_s7 + $0x68] sm:$0xff] }
 0x269   :  { %565 = vmatmul.mubr.f32.gmra.mrb[10].mxu1 %v430_v1 }
 0x26a   :  { %v433_v14 = vmax.f32 %v417_v4, 0.0  ;;  %v432_v13 = vmax.f32 %v416_v5, 0.0  ;;  %v391_v8 = vmul.f32 %v1425_v39, %v363_v6  ;;  %v390_v54 = vmul.f32 %v1422_v40, %v362_v7  ;;  %v594_v40 = vld [vmem:[%s1538_s7 + $0x70] sm:$0xff] }
 0x26b   :  { %v921_v39 = vpack.c.bf16 %v593_v31, %v592_v30 }
 0x26c   :  { %569 = vmatprep.mubr.f32.mxu1 %v433_v14  ;;  %v419_v56 = vadd.f32 %v1432_v53, %v391_v8  ;;  %v418_v9 = vadd.f32 %v1429_v44, %v390_v54  ;;  %v595_v44 = vld [vmem:[%s1538_s7 + $0x78] sm:$0xff] }
 0x26d   :  { %570 = vmatmul.mubr.f32.gmra.mrb[12].mxu1 %v432_v13  ;;  %922 = vmatprep.subr.bf16.mxu0 %v921_v39  ;;  %v925_v53 = vpack.c.bf16 %v595_v44, %v594_v40 }
 0x26e   :  { %v435_v27 = vmax.f32 %v419_v56, 0.0  ;;  %v434_v26 = vmax.f32 %v418_v9, 0.0  ;;  %924 = vmatpush3.bf16.msra.mxu0 %v921_v39 }
 0x26f   :  { %926 = vmatprep.subr.bf16.mxu0 %v925_v53 }
 0x270   :  { %574 = vmatprep.mubr.f32.mxu1 %v435_v27 }
 0x271   :  { %575 = vmatmul.mubr.f32.gmra.mrb[14].mxu1 %v434_v26 }
 0x272   :  { %928 = vmatpush3.bf16.msra.mxu0 %v925_v53 }
 0x328   :  { %v765_v10 = vpop.f32.mrb[0].mxu1 }
 0x329   :  { %v766_v12 = vpop.f32.mrb[1].mxu1 }
 0x32a   :  { %v767_v15 = vadd.f32 %v766_v12, %v765_v10 }
 0x32c   :  { %v542_v16 = vadd.f32 %v767_v15, %v731_v11  ;;  %v768_v17 = vpop.f32.mrb[2].mxu1 }
 0x32d   :  { %v769_v20 = vpop.f32.mrb[3].mxu1 }
 0x32e   :  { %v770_v21 = vadd.f32 %v769_v20, %v768_v17  ;;  %845 = vmatprep.mubr.f32.mxu0 %v542_v16 }
 0x330   :  { %v547_v59 = vadd.f32 %v770_v21, %v731_v11  ;;  %v771_v61 = vpop.f32.mrb[4].mxu1 }
 0x331   :  { %v772_v35 = vpop.f32.mrb[5].mxu1 }
 0x332   :  { %v773_v33 = vadd.f32 %v772_v35, %v771_v61  ;;  %846 = vmatmul.mubr.f32.vlgmr.msra.gmra.mrb[16].mxu0 %v547_v59 }
 0x334   :  { %v552_v22 = vadd.f32 %v773_v33, %v731_v11  ;;  %v774_v24 = vpop.f32.mrb[6].mxu1 }
 0x335   :  { %v775_v28 = vpop.f32.mrb[7].mxu1 }
 0x336   :  { %v776_v29 = vadd.f32 %v775_v28, %v774_v24  ;;  %848 = vmatprep.mubr.f32.mxu0 %v552_v22 }
 0x338   :  { %v557_v32 = vadd.f32 %v776_v29, %v731_v11  ;;  %v777_v34 = vpop.f32.mrb[8].mxu1 }
 0x339   :  { %v778_v37 = vpop.f32.mrb[9].mxu1 }
 0x33a   :  { %v779_v36 = vadd.f32 %v778_v37, %v777_v34  ;;  %849 = vmatmul.mubr.f32.gmra.mrb[18].mxu0 %v557_v32 }
 0x33c   :  { %v562_v0 = vadd.f32 %v779_v36, %v731_v11  ;;  %v780_v43 = vpop.f32.mrb[10].mxu1 }
 0x33d   :  { %v781_v42 = vpop.f32.mrb[11].mxu1 }
 0x33e   :  { %v782_v2 = vadd.f32 %v781_v42, %v780_v43  ;;  %851 = vmatprep.mubr.f32.mxu0 %v562_v0 }
 0x340   :  { %v567_v38 = vadd.f32 %v782_v2, %v731_v11  ;;  %v783_v45 = vpop.f32.mrb[12].mxu1 }
 0x341   :  { %v784_v41 = vpop.f32.mrb[13].mxu1 }
 0x342   :  { %v785_v47 = vadd.f32 %v784_v41, %v783_v45  ;;  %852 = vmatmul.mubr.f32.gmra.mrb[20].mxu0 %v567_v38 }
 0x344   :  { %v572_v48 = vadd.f32 %v785_v47, %v731_v11  ;;  %v786_v46 = vpop.f32.mrb[14].mxu1 }
 0x345   :  { %v787_v55 = vpop.f32.mrb[15].mxu1 }
 0x346   :  { %v788_v52 = vadd.f32 %v787_v55, %v786_v46  ;;  %854 = vmatprep.mubr.f32.mxu0 %v572_v48 }
 0x348   :  { %v577_v50 = vadd.f32 %v788_v52, %v731_v11 }
 0x34a   :  { %855 = vmatmul.mubr.f32.gmra.mrb[22].mxu0 %v577_v50 }
 0x405   :  { %v847_v58 = vpop.f32.mrb[16].mxu0 }
 0x406   :  { %v675_v49 = vadd.f32 %v847_v58, %v732_v57  ;;  %v669_v51 = vpop.f32.mrb[17].mxu0 }
 0x407   :  { %v670_v60 = vadd.f32 %v732_v57, %v669_v51 }
 0x408   :  { %710 = vst.msk [vmem:[%s1540_s9 + $0x8] sm:$0xff] %vm708_vm1, %v675_v49 }
 0x409   :  { %709 = vst.msk [vmem:[%s1540_s9] sm:$0xff] %vm708_vm1, %v670_v60 }
 0x40d   :  { %v850_v62 = vpop.f32.mrb[18].mxu0 }
 0x40e   :  { %v685_v19 = vadd.f32 %v850_v62, %v732_v57  ;;  %v679_v23 = vpop.f32.mrb[19].mxu0 }
 0x40f   :  { %v680_v3 = vadd.f32 %v732_v57, %v679_v23 }
 0x410   :  { %712 = vst.msk [vmem:[%s1540_s9 + $0x18] sm:$0xff] %vm708_vm1, %v685_v19 }
 0x411   :  { %711 = vst.msk [vmem:[%s1540_s9 + $0x10] sm:$0xff] %vm708_vm1, %v680_v3 }
 0x415   :  { %v853_v1 = vpop.f32.mrb[20].mxu0 }
 0x416   :  { %v695_v25 = vadd.f32 %v853_v1, %v732_v57  ;;  %v689_v63 = vpop.f32.mrb[21].mxu0 }
 0x417   :  { %v690_v18 = vadd.f32 %v732_v57, %v689_v63 }
 0x418   :  { %714 = vst.msk [vmem:[%s1540_s9 + $0x28] sm:$0xff] %vm708_vm1, %v695_v25 }
 0x419   :  { %713 = vst.msk [vmem:[%s1540_s9 + $0x20] sm:$0xff] %vm708_vm1, %v690_v18 }
 0x41d   :  { %v856_v4 = vpop.f32.mrb[22].mxu0 }
 0x41e   :  { %v705_v5 = vadd.f32 %v856_v4, %v732_v57  ;;  %v699_v6 = vpop.f32.mrb[23].mxu0 }
 0x41f   :  { %v700_v7 = vadd.f32 %v732_v57, %v699_v6 }
 0x420   :  { %716 = vst.msk [vmem:[%s1540_s9 + $0x38] sm:$0xff] %vm708_vm1, %v705_v5 }
 0x421   :  { %715 = vst.msk [vmem:[%s1540_s9 + $0x30] sm:$0xff] %vm708_vm1, %v700_v7 }
 0x422   :  { %721 = vsyncpa [#allocation3], 1 }
 0x423   :  { %722 = vsyncpa [#allocation5], 1 }

</bundles_post_ra>
